<compile_context>
chip_gen: v6e
topology: v6e:2x2x1
jax: 0.10.0
libtpu: 0.0.40
codegen_flags: <defaults>
</compile_context>

<pallas_src>
import jax
import jax.numpy as jnp
from jax.experimental import pallas as pl
from jax.experimental.pallas import tpu as pltpu


def _round_up(v, m):
    return ((v + m - 1) // m) * m


def _make_kernel(n_layers, latent_idx, act_flags, *, mxu_bf16=False,
                 tanh_bf16=False):
    """Fused kernel body for the full 1x1-conv chain (channels x pixels)."""

    def kernel(*refs):
        x_ref = refs[0]                      # (C_in, tile_p)
        w_refs = refs[1:1 + n_layers]        # each (Cout_i, Cin_i)
        out_ref = refs[1 + n_layers]         # (C_out, tile_p)
        lat_ref = refs[2 + n_layers]         # (C_lat, tile_p)

        h = x_ref[...].astype(jnp.float32)
        for li in range(n_layers):
            w = w_refs[li][...]
            if mxu_bf16:
                # bf16 operands, f32 accumulation (single MXU pass).
                lhs = w.astype(jnp.bfloat16)
                rhs = h.astype(jnp.bfloat16)
            else:
                lhs = w.astype(jnp.float32)
                rhs = h
            h = jnp.dot(lhs, rhs, preferred_element_type=jnp.float32)
            if act_flags[li]:
                if tanh_bf16:
                    # bf16 EUP tanh (v6e/v7x); roughly doubles tanh throughput.
                    h = jnp.tanh(h.astype(jnp.bfloat16)).astype(jnp.float32)
                else:
                    h = jnp.tanh(h)
            if li == latent_idx:
                lat_ref[...] = h.astype(lat_ref.dtype)
        out_ref[...] = h.astype(out_ref.dtype)

    return kernel


def _pad_interior_channels(weights, latent_idx):
    """Pads interior channel widths to multiples of 8 (sublane granularity).

    Exposed dims (layer-0 Cin, last layer Cout, latent Cout) stay natural so
    the big HBM tensors need no pad/slice copies.  Zero padding is exact:
    tanh(0) = 0 and zero rows/cols contribute nothing to the matmuls.
    """
    n = len(weights)
    out_pad = []
    for i, w in enumerate(weights):
        co = w.shape[0]
        if i == n - 1 or i == latent_idx:
            out_pad.append(co)               # exposed as a kernel output
        else:
            out_pad.append(_round_up(co, 8))
    padded = []
    for i, w in enumerate(weights):
        co, ci = w.shape
        ci_pad = ci if i == 0 else out_pad[i - 1]
        padded.append(jnp.pad(w, ((0, out_pad[i] - co), (0, ci_pad - ci))))
    return padded


def _physical_vmem_bytes():
    try:
        return int(pltpu.get_tpu_info().vmem_capacity_bytes)
    except Exception:
        return 64 << 20                      # conservative (v7x per-TC VMEM)


def autoencoder_forward(x_nchw, weights, latent_idx, act_flags, *,
                        tile_p=16384, stream_dtype=jnp.float32,
                        out_dtype=jnp.float32, mxu_bf16=False,
                        tanh_bf16=False):
    """Runs the AutoEncoder forward pass.

    Args:
      x_nchw: (N, C_in, H, W) float32 input.
      weights: list of (Cout_i, Cin_i) matrices (PyTorch 1x1 conv weights with
        the trailing 1x1 squeezed), in application order:
          encode_convs..., latent_conv, latent_deconv, decode_convs(reversed)...
      latent_idx: index into `weights` whose output is the latent tensor.
      act_flags: per-layer bool, whether Tanh is applied after the matmul.
      tile_p: requested pixels-per-grid-step.  Rounded down to a multiple of
        128 that exactly divides the 128-padded pixel count and fits the VMEM
        budget (so there is no per-tile padding / post-kernel slicing).
      stream_dtype: dtype of the HBM->VMEM input/weight stream.
      out_dtype: dtype of the reconstruction/latent writeback.  bf16 cuts HBM
        writeback bytes ~2x (accuracy trade-off; tanh outputs are in [-1,1]).
      mxu_bf16: feed the MXU bf16 operands with f32 accumulation (opt-in).
      tanh_bf16: run tanh in bf16 on the EUP (opt-in; v6e/v7x only benefit).

    Returns:
      (output_nchw, latent_nchw) matching the PyTorch module's (output, latent).
    """
    N, c_in, H, W = x_nchw.shape
    HW = H * W
    n_layers = len(weights)
    c_out = weights[-1].shape[0]             # == C_in of the original input
    c_lat = weights[latent_idx].shape[0]     # latent channels

    weights_p = [w.astype(stream_dtype) for w in
                 _pad_interior_channels(weights, latent_idx)]
    max_c = max([c_in] + [w.shape[0] for w in weights_p])

    in_size = jnp.dtype(stream_dtype).itemsize
    out_size = jnp.dtype(out_dtype).itemsize

    # --- pixel tiling (lane axis) -------------------------------------------
    # Pad H*W only up to a multiple of 128, then pick tile_p as an exact
    # divisor of the padded count so no per-tile padding (and no post-kernel
    # slicing when H*W is already 128-aligned) is ever needed.
    HW_pad = _round_up(HW, 128)
    n128 = HW_pad // 128                     # pixel extent in 128-lane units

    phys_vmem = _physical_vmem_bytes()
    vmem_cap = int(phys_vmem * 0.85)         # leave Mosaic internal headroom
    vmem_budget = min(48 << 20, vmem_cap)

    def est_vmem(tp):
        stream = 2 * (c_in * in_size + (c_out + c_lat) * out_size) * tp
        work = 2 * max_c * tp * 4                          # f32 intermediates
        wbytes = 2 * sum(int(w.size) for w in weights_p) * in_size
        return stream + work + wbytes

    req_units = max(1, min(int(tile_p) // 128, n128))
    divisors = sorted({d for d in range(1, n128 + 1) if n128 % d == 0},
                      reverse=True)
    candidates = [d for d in divisors
                  if d <= req_units and est_vmem(d * 128) <= vmem_budget]
    if not candidates:
        candidates = [1]
    if N == 1 and n128 >= 2:
        # Megacore balance (v7x): make sure >= 2 shardable pixel tiles exist.
        two_plus = [d for d in candidates if n128 // d >= 2]
        if two_plus:
            candidates = two_plus
    tile_p = candidates[0] * 128
    n_p_tiles = HW_pad // tile_p

    # NCHW -> (N, C, H*W): a free reshape (NCHW is already channel-major).
    x3 = x_nchw.reshape(N, c_in, HW).astype(stream_dtype)
    if HW_pad != HW:
        # Only the last (<128-pixel) sliver is padded; never a full tile.
        x3 = jnp.pad(x3, ((0, 0), (0, 0), (0, HW_pad - HW)))

    kernel = _make_kernel(n_layers, latent_idx, act_flags,
                          mxu_bf16=mxu_bf16, tanh_bf16=tanh_bf16)

    # Grid: (pixel tiles, batch) -- pixel axis first so it shards across the
    # two v7x TensorCores even when N == 1.
    in_specs = [pl.BlockSpec((None, c_in, tile_p), lambda p, n: (n, 0, p))]
    for w in weights_p:
        # Full weight, constant block index -> stays resident in VMEM.
        in_specs.append(pl.BlockSpec(w.shape, lambda p, n: (0, 0)))

    out_specs = [
        pl.BlockSpec((None, c_out, tile_p), lambda p, n: (n, 0, p)),
        pl.BlockSpec((None, c_lat, tile_p), lambda p, n: (n, 0, p)),
    ]

    # Advisory cost estimate for XLA scheduling around the custom call.
    M = N * HW
    flops = 2 * M * sum(int(w.shape[0] * w.shape[1]) for w in weights)
    transcendentals = M * sum(int(w.shape[0])
                              for w, a in zip(weights, act_flags) if a)
    bytes_accessed = (in_size * (N * c_in * HW
                                 + sum(int(w.size) for w in weights))
                      + out_size * (N * c_out * HW + N * c_lat * HW))
    cost = pl.CostEstimate(flops=flops,
                           transcendentals=transcendentals,
                           bytes_accessed=bytes_accessed)

    vmem_limit = int(min(max(est_vmem(tile_p) + (8 << 20), 32 << 20), vmem_cap))

    out3, lat3 = pl.pallas_call(
        kernel,
        out_shape=(
            jax.ShapeDtypeStruct((N, c_out, HW_pad), out_dtype),
            jax.ShapeDtypeStruct((N, c_lat, HW_pad), out_dtype),
        ),
        grid_spec=pltpu.PrefetchScalarGridSpec(
            num_scalar_prefetch=0,
            grid=(n_p_tiles, N),
            in_specs=in_specs,
            out_specs=out_specs,
        ),
        compiler_params=pltpu.CompilerParams(
            dimension_semantics=("parallel", "parallel"),
            vmem_limit_bytes=vmem_limit,
        ),
        cost_estimate=cost,
    )(x3, *weights_p)

    if HW_pad != HW:
        out3 = out3[:, :, :HW]
        lat3 = lat3[:, :, :HW]

    # (N, C, H*W) -> NCHW: free reshape, no transpose.
    return out3.reshape(N, c_out, H, W), lat3.reshape(N, c_lat, H, W)


def build_autoencoder_params(key, inchannel, hidden_layers, latent_chan):
    """Deterministically builds the weight chain mirroring AutoEncoder.__init__.

    Returns (weights, latent_idx, act_flags) for autoencoder_forward.
    Weights are stored in PyTorch conv order (Cout, Cin) (1x1 squeezed).
    """
    assert latent_chan > 0
    weights = []
    act_flags = []

    def new_w(key, cout, cin):
        # deterministic synthetic init (kaiming-uniform-like scale)
        bound = 1.0 / jnp.sqrt(cin)
        return jax.random.uniform(key, (cout, cin), jnp.float32, -bound, bound)

    ch = inchannel
    keys = jax.random.split(key, 2 * len(hidden_layers) + 2)
    ki = 0

    enc_ws = []
    dec_ws = []      # decode convs, in construction order (will be reversed)
    dec_acts = []
    for i, h in enumerate(hidden_layers):
        enc_ws.append(new_w(keys[ki], h, ch)); ki += 1
        dec_ws.append(new_w(keys[ki], ch, h)); ki += 1
        dec_acts.append(i != 0)  # first decode conv has NO activation
        ch = h

    latent_w = new_w(keys[ki], latent_chan, ch); ki += 1
    latent_de_w = new_w(keys[ki], ch, latent_chan); ki += 1

    # forward order: encodes, latent_conv, latent_deconv, reversed decodes
    for w in enc_ws:
        weights.append(w); act_flags.append(True)
    weights.append(latent_w); act_flags.append(True)
    latent_idx = len(weights) - 1
    weights.append(latent_de_w); act_flags.append(len(hidden_layers) > 0)
    for w, a in zip(reversed(dec_ws), reversed(dec_acts)):
        weights.append(w); act_flags.append(a)

    return weights, latent_idx, act_flags


def reference_forward(x_nchw, weights, latent_idx, act_flags):
    """Pure-JAX reference (per-pixel matmul chain)."""
    N, C, H, W = x_nchw.shape
    h = jnp.transpose(x_nchw, (0, 2, 3, 1)).reshape(-1, C)
    lat = None
    for li, (w, act) in enumerate(zip(weights, act_flags)):
        h = h @ w.T                      # w is (Cout, Cin)
        if act:
            h = jnp.tanh(h)
        if li == latent_idx:
            lat = h
    out = jnp.transpose(h.reshape(N, H, W, -1), (0, 3, 1, 2))
    lat = jnp.transpose(lat.reshape(N, H, W, -1), (0, 3, 1, 2))
    return out, lat


if __name__ == "__main__":
    key = jax.random.PRNGKey(0)
    k_x, k_w = jax.random.split(key)

    # Small shapes consistent with the module: NCHW input, 1x1 conv chain.
    N, C_IN, H, W = 2, 4, 16, 16
    HIDDEN_LAYERS = [8, 16]
    LATENT_CHAN = 32

    x = jax.random.normal(k_x, (N, C_IN, H, W), jnp.float32)
    weights, latent_idx, act_flags = build_autoencoder_params(
        k_w, C_IN, HIDDEN_LAYERS, LATENT_CHAN)

    # --- default (exact, f32 everywhere) -----------------------------------
    out, lat = autoencoder_forward(x, weights, latent_idx, act_flags)
    out = jax.block_until_ready(out)
    lat = jax.block_until_ready(lat)

    ref_out, ref_lat = reference_forward(x, weights, latent_idx, act_flags)
    assert out.shape == (N, C_IN, H, W)
    assert lat.shape == (N, LATENT_CHAN, H, W)
    assert jnp.allclose(out, ref_out, atol=1e-5, rtol=1e-5)
    assert jnp.allclose(lat, ref_lat, atol=1e-5, rtol=1e-5)

    # --- opt-in low-precision fast path (bf16 writeback / MXU / tanh) ------
    out_bf, lat_bf = autoencoder_forward(
        x, weights, latent_idx, act_flags,
        out_dtype=jnp.bfloat16, mxu_bf16=True, tanh_bf16=True)
    out_bf = jax.block_until_ready(out_bf)
    lat_bf = jax.block_until_ready(lat_bf)
    assert out_bf.dtype == jnp.bfloat16 and lat_bf.dtype == jnp.bfloat16
    assert jnp.allclose(out_bf.astype(jnp.float32), ref_out, atol=1e-1, rtol=1e-1)
    assert jnp.allclose(lat_bf.astype(jnp.float32), ref_lat, atol=1e-1, rtol=1e-1)

    # TODO(synk): latent_chan == 0 branch just returns a learned (C,1,1) center
    # parameter with no compute; nothing to put in a kernel.

    print("KERNEL_OK")
</pallas_src>

<mosaic_0001>
module attributes {stable_mosaic.version = 11 : i64} {
  func.func @kernel(%arg0: i32, %arg1: i32, %arg2: memref<1x4x256xf32, #tpu.memory_space<vmem>>, %arg3: memref<8x4xf32, #tpu.memory_space<vmem>>, %arg4: memref<16x8xf32, #tpu.memory_space<vmem>>, %arg5: memref<32x16xf32, #tpu.memory_space<vmem>>, %arg6: memref<16x32xf32, #tpu.memory_space<vmem>>, %arg7: memref<8x16xf32, #tpu.memory_space<vmem>>, %arg8: memref<4x8xf32, #tpu.memory_space<vmem>>, %arg9: memref<1x4x256xf32, #tpu.memory_space<vmem>>, %arg10: memref<1x32x256xf32, #tpu.memory_space<vmem>>) attributes {dimension_semantics = [#tpu.dimension_semantics<parallel>, #tpu.dimension_semantics<parallel>], iteration_bounds = array<i64: 1, 2>, scalar_prefetch = 0 : i64, scratch_operands = 0 : i64, tpu.core_type = #tpu.core_type<tc>, window_params = [{transform_indices = @transform_0, window_bounds = array<i64: 1, 4, 256>}, {pipeline_mode = #tpu.pipeline_mode<synchronous>, transform_indices = @transform_1, window_bounds = array<i64: 8, 4>}, {pipeline_mode = #tpu.pipeline_mode<synchronous>, transform_indices = @transform_2, window_bounds = array<i64: 16, 8>}, {pipeline_mode = #tpu.pipeline_mode<synchronous>, transform_indices = @transform_3, window_bounds = array<i64: 32, 16>}, {pipeline_mode = #tpu.pipeline_mode<synchronous>, transform_indices = @transform_4, window_bounds = array<i64: 16, 32>}, {pipeline_mode = #tpu.pipeline_mode<synchronous>, transform_indices = @transform_5, window_bounds = array<i64: 8, 16>}, {pipeline_mode = #tpu.pipeline_mode<synchronous>, transform_indices = @transform_6, window_bounds = array<i64: 4, 8>}, {transform_indices = @transform_7, window_bounds = array<i64: 1, 4, 256>}, {transform_indices = @transform_8, window_bounds = array<i64: 1, 32, 256>}]} {
    %c0 = arith.constant 0 : index
    %c0_0 = arith.constant 0 : index
    %c0_1 = arith.constant 0 : index
    %0 = vector.load %arg2[%c0, %c0_0, %c0_1] : memref<1x4x256xf32, #tpu.memory_space<vmem>>, vector<1x4x256xf32>
    %1 = vector.shape_cast %0 : vector<1x4x256xf32> to vector<4x256xf32>
    %c0_2 = arith.constant 0 : index
    %c0_3 = arith.constant 0 : index
    %2 = vector.load %arg3[%c0_2, %c0_3] : memref<8x4xf32, #tpu.memory_space<vmem>>, vector<8x4xf32>
    %cst = arith.constant dense<0.000000e+00> : vector<8x256xf32>
    %3 = tpu.matmul %2, %1, %cst {dimension_numbers = #tpu.dot_dimension_numbers<[1], [0], [0], [1], [0, 0, 1, 1], [], []>} : vector<8x4xf32>, vector<4x256xf32>, vector<8x256xf32> -> vector<8x256xf32>
    %4 = math.tanh %3 : vector<8x256xf32>
    %c0_4 = arith.constant 0 : index
    %c0_5 = arith.constant 0 : index
    %5 = vector.load %arg4[%c0_4, %c0_5] : memref<16x8xf32, #tpu.memory_space<vmem>>, vector<16x8xf32>
    %cst_6 = arith.constant dense<0.000000e+00> : vector<16x256xf32>
    %6 = tpu.matmul %5, %4, %cst_6 {dimension_numbers = #tpu.dot_dimension_numbers<[1], [0], [0], [1], [0, 0, 1, 1], [], []>} : vector<16x8xf32>, vector<8x256xf32>, vector<16x256xf32> -> vector<16x256xf32>
    %7 = math.tanh %6 : vector<16x256xf32>
    %c0_7 = arith.constant 0 : index
    %c0_8 = arith.constant 0 : index
    %8 = vector.load %arg5[%c0_7, %c0_8] : memref<32x16xf32, #tpu.memory_space<vmem>>, vector<32x16xf32>
    %cst_9 = arith.constant dense<0.000000e+00> : vector<32x256xf32>
    %9 = tpu.matmul %8, %7, %cst_9 {dimension_numbers = #tpu.dot_dimension_numbers<[1], [0], [0], [1], [0, 0, 1, 1], [], []>} : vector<32x16xf32>, vector<16x256xf32>, vector<32x256xf32> -> vector<32x256xf32>
    %10 = math.tanh %9 : vector<32x256xf32>
    %c0_10 = arith.constant 0 : index
    %c0_11 = arith.constant 0 : index
    %c0_12 = arith.constant 0 : index
    %11 = vector.load %arg10[%c0_10, %c0_11, %c0_12] : memref<1x32x256xf32, #tpu.memory_space<vmem>>, vector<1x32x256xf32>
    %12 = vector.shape_cast %11 : vector<1x32x256xf32> to vector<32x256xf32>
    %13 = vector.shape_cast %10 : vector<32x256xf32> to vector<1x32x256xf32>
    tpu.vector_store %arg10[%c0_10, %c0_11, %c0_12], %13 {strides = array<i32>} : memref<1x32x256xf32, #tpu.memory_space<vmem>>, vector<1x32x256xf32>,
    %c0_13 = arith.constant 0 : index
    %c0_14 = arith.constant 0 : index
    %14 = vector.load %arg6[%c0_13, %c0_14] : memref<16x32xf32, #tpu.memory_space<vmem>>, vector<16x32xf32>
    %cst_15 = arith.constant dense<0.000000e+00> : vector<16x256xf32>
    %15 = tpu.matmul %14, %10, %cst_15 {dimension_numbers = #tpu.dot_dimension_numbers<[1], [0], [0], [1], [0, 0, 1, 1], [], []>} : vector<16x32xf32>, vector<32x256xf32>, vector<16x256xf32> -> vector<16x256xf32>
    %16 = math.tanh %15 : vector<16x256xf32>
    %c0_16 = arith.constant 0 : index
    %c0_17 = arith.constant 0 : index
    %17 = vector.load %arg7[%c0_16, %c0_17] : memref<8x16xf32, #tpu.memory_space<vmem>>, vector<8x16xf32>
    %cst_18 = arith.constant dense<0.000000e+00> : vector<8x256xf32>
    %18 = tpu.matmul %17, %16, %cst_18 {dimension_numbers = #tpu.dot_dimension_numbers<[1], [0], [0], [1], [0, 0, 1, 1], [], []>} : vector<8x16xf32>, vector<16x256xf32>, vector<8x256xf32> -> vector<8x256xf32>
    %19 = math.tanh %18 : vector<8x256xf32>
    %c0_19 = arith.constant 0 : index
    %c0_20 = arith.constant 0 : index
    %20 = vector.load %arg8[%c0_19, %c0_20] : memref<4x8xf32, #tpu.memory_space<vmem>>, vector<4x8xf32>
    %cst_21 = arith.constant dense<0.000000e+00> : vector<4x256xf32>
    %21 = tpu.matmul %20, %19, %cst_21 {dimension_numbers = #tpu.dot_dimension_numbers<[1], [0], [0], [1], [0, 0, 1, 1], [], []>} : vector<4x8xf32>, vector<8x256xf32>, vector<4x256xf32> -> vector<4x256xf32>
    %c0_22 = arith.constant 0 : index
    %c0_23 = arith.constant 0 : index
    %c0_24 = arith.constant 0 : index
    %22 = vector.load %arg9[%c0_22, %c0_23, %c0_24] : memref<1x4x256xf32, #tpu.memory_space<vmem>>, vector<1x4x256xf32>
    %23 = vector.shape_cast %22 : vector<1x4x256xf32> to vector<4x256xf32>
    %24 = vector.shape_cast %21 : vector<4x256xf32> to vector<1x4x256xf32>
    tpu.vector_store %arg9[%c0_22, %c0_23, %c0_24], %24 {strides = array<i32>} : memref<1x4x256xf32, #tpu.memory_space<vmem>>, vector<1x4x256xf32>,
    return
  }
  func.func @transform_0(%arg0: i32, %arg1: i32) -> (i32, i32, i32) {
    %c0_i32 = arith.constant 0 : i32
    %c0_i32_0 = arith.constant 0 : i32
    return %arg1, %c0_i32, %arg0 : i32, i32, i32
  }
  func.func @transform_1(%arg0: i32, %arg1: i32) -> (i32, i32) {
    %c0_i32 = arith.constant 0 : i32
    %c0_i32_0 = arith.constant 0 : i32
    %c0_i32_1 = arith.constant 0 : i32
    return %c0_i32, %c0_i32_0 : i32, i32
  }
  func.func @transform_2(%arg0: i32, %arg1: i32) -> (i32, i32) {
    %c0_i32 = arith.constant 0 : i32
    %c0_i32_0 = arith.constant 0 : i32
    %c0_i32_1 = arith.constant 0 : i32
    return %c0_i32, %c0_i32_0 : i32, i32
  }
  func.func @transform_3(%arg0: i32, %arg1: i32) -> (i32, i32) {
    %c0_i32 = arith.constant 0 : i32
    %c0_i32_0 = arith.constant 0 : i32
    %c0_i32_1 = arith.constant 0 : i32
    return %c0_i32, %c0_i32_0 : i32, i32
  }
  func.func @transform_4(%arg0: i32, %arg1: i32) -> (i32, i32) {
    %c0_i32 = arith.constant 0 : i32
    %c0_i32_0 = arith.constant 0 : i32
    %c0_i32_1 = arith.constant 0 : i32
    return %c0_i32, %c0_i32_0 : i32, i32
  }
  func.func @transform_5(%arg0: i32, %arg1: i32) -> (i32, i32) {
    %c0_i32 = arith.constant 0 : i32
    %c0_i32_0 = arith.constant 0 : i32
    %c0_i32_1 = arith.constant 0 : i32
    return %c0_i32, %c0_i32_0 : i32, i32
  }
  func.func @transform_6(%arg0: i32, %arg1: i32) -> (i32, i32) {
    %c0_i32 = arith.constant 0 : i32
    %c0_i32_0 = arith.constant 0 : i32
    %c0_i32_1 = arith.constant 0 : i32
    return %c0_i32, %c0_i32_0 : i32, i32
  }
  func.func @transform_7(%arg0: i32, %arg1: i32) -> (i32, i32, i32) {
    %c0_i32 = arith.constant 0 : i32
    %c0_i32_0 = arith.constant 0 : i32
    return %arg1, %c0_i32, %arg0 : i32, i32, i32
  }
  func.func @transform_8(%arg0: i32, %arg1: i32) -> (i32, i32, i32) {
    %c0_i32 = arith.constant 0 : i32
    %c0_i32_0 = arith.constant 0 : i32
    return %arg1, %c0_i32, %arg0 : i32, i32, i32
  }
}

</mosaic_0001>

<bundles_post_ra>
// kernel: tpu_custom_call.1
= control target key start
LH: loop header
LB: loop body
LE: loop exit
PB: predicated region body
PF: predicated region fallthrough
CT: control target
= control target key end

     0   :  { %s1538_s0 = inlined_call_operand.vmem [shape: f32[2,4,256], index: 0, kind: input, shape index: {}]   ;;  %s1539_s1 = inlined_call_operand.vmem [shape: f32[8,4], index: 1, kind: input, shape index: {}]   ;;  %s1540_s2 = inlined_call_operand.vmem [shape: f32[16,8], index: 2, kind: input, shape index: {}]   ;;  %s1541_s3 = inlined_call_operand.vmem [shape: f32[32,16], index: 3, kind: input, shape index: {}]   ;;  %s1542_s4 = inlined_call_operand.vmem [shape: f32[16,32], index: 4, kind: input, shape index: {}]   ;;  %s1543_s5 = inlined_call_operand.vmem [shape: f32[8,16], index: 5, kind: input, shape index: {}]   ;;  %s1544_s6 = inlined_call_operand.vmem [shape: f32[4,8], index: 6, kind: input, shape index: {}]   ;;  %s1545_s7 = inlined_call_operand.hbm [shape: f32[2,4,256], index: 7, kind: output, shape index: {0}]   ;;  %s1546_s8 = inlined_call_operand.hbm [shape: f32[2,32,256], index: 8, kind: output, shape index: {1}]  }
   0x1   :  { %1547 = sst [smem:[#allocation8_spill]] %s1538_s0 }
   0x2   :  { %1548 = sst [smem:[#allocation9_spill]] %s1539_s1 }
   0x3   :  { %1549 = sst [smem:[#allocation10_spill]] %s1540_s2 }
   0x4   :  { %14 = vsyncpa [#allocation3], 0 }
   0x5   :  { %16 = vsyncpa [#allocation3 + $0x1], 0 }
   0x6   :  { %17 = vsyncpa [#allocation5], 0 }
   0x7   :  { %19 = vsyncpa [#allocation5 + $0x1], 0  ;;  %s1340_s27 = smov 0   ;;  %s1342_s28 = smov 0  }
   0x8   :  { %s1344_s29 = smov 0   ;;  %s1346_s30 = smov 0  }
   0x9   :  { %s1348_s9 = smov 0   ;;  %s1350_s10 = smov 0  }
   0xa LB: > { %s1045_s11 = sadd.s32 4294967295, %s1288_s10   ;;  %s1046_s12 = sadd.s32 4294967294, %s1288_s10   ;;  %s1288_s10 = sphi %s1350_s10, %s25_s10   ;;  %s1284_s9 = sphi %s1348_s9, %s1560_s9   ;;  %s1280_s30 = sphi %s1346_s30, %s1559_s30   ;;  %s1276_s29 = sphi %s1344_s29, %s1558_s29   ;;  %s1272_s28 = sphi %s1342_s28, %s1557_s28   ;;  %s1268_s27 = sphi %s1340_s27, %s1556_s27  }
   0xb   : > { %s34_s13 = sadd.s32 1, %s1284_s9  ;;  %s200_s14 = sadd.s32 1, %s1276_s29 }
   0xc   : > { %p35_p0 = scmp.ge.s32.totalorder %s34_s13, 2  ;;  %p210_p1 = scmp.ne.s32.totalorder %s1276_s29, %s1272_s28 }
   0xd   : > { %p211_p2 = scmp.eq.s32.totalorder %s1045_s11, 1  ;;  %p216_p3 = scmp.ne.s32.totalorder %s1272_s28, %s1268_s27 }
   0xe   : > { %s1562_s13 = smov (%p35_p0, %s34_s13), 0  ;;  %p217_p5 = scmp.eq.s32.totalorder %s1046_s12, 1 }
   0xf   : > { %p1380_p4 = por %p211_p2, %p210_p1  ;;  %s195_s16 = ssub.s32 %s1284_s9, %s1562_s13 }
  0x10   : > { %p1049_p6 = scmp.ge.s32.totalorder %s1288_s10, 1  ;;  %p198_p7 = scmp.eq.s32.totalorder %s195_s16, 0 }
  0x11   : > { %p1387_p8 = por %p217_p5, %p216_p3  ;;  %p294_p9 = scmp.lt.s32.totalorder %s1288_s10, 3 }
  0x12   : > { %s1393_s18 = scalar_select %p198_p7, %s1276_s29, %s200_s14  }
  0x13   : > { %p295_p10 = pnand %p1049_p6, %p294_p9 }
  0x14   : > { %p338_p11 = scmp.lt.s32.totalorder (!%p295_p10), %s1280_s30, 1  ;;  %s1552_s0 = sld [smem:[#allocation8_spill]] (!%p295_p10) }
  0x15   : > { %298 = sbr.rel (%p295_p10) target bundleno = 1330 (0x532), region = 48  ;;  %s1553_s1 = sld [smem:[#allocation9_spill]] (!%p295_p10) }
  0x16   : > { %s1554_s2 = sld [smem:[#allocation10_spill]] (!%p295_p10)  ;;  %s1437_s26 = sand.u32 (!%p295_p10), 1, %s1272_s28  }
  0x17   : > { %s1051_s11 = sshll.u32 (!%p295_p10), %s1437_s26, 6  ;;  %s1291_s22 = smov (!%p295_p10), [#allocation4]  }
  0x18   : > { %s1440_s12 = scalar_lea.vmem (!%p295_p10), [#allocation4], %s1051_s11  ;;  %s1077_s11 = sshll.u32 (!%p295_p10), %s1280_s30, 10 }
  0x19   : > { %s931_s25 = sshll.u32 (!%p295_p10), %s1440_s12, 4  ;;  %s1467_s25 = int_to_ptr.vmem [resolvable:$true] %s931_s25 }
  0x1a   : > { %v1290_v0 = vmov 0.0   ;;  %s339_s19 = scalar_select %p338_p11, %s1280_s30, 1  ;;  %vm357_vm0 = vcmask 1043456   ;;  %vm353_vm1 = vcmask 31744   ;;  %vm437_vm2 = vcmask 64512   ;;  %v525_v17 = vld [vmem:[%s1541_s3] sm:$0xff] }
  0x1b   : > { %426 = vmatprep.mubr.f32.mxu0 %v1290_v0  ;;  %508 = vmatprep.mubr.f32.mxu1 %v1290_v0  ;;  %v350_v3 = vld [vmem:[%s1553_s1] sm:$0xff]  ;;  %vm529_vm3 = vcmask 130048   ;;  %v526_v19 = vld [vmem:[%s1541_s3 + $0x8] sm:$0xff]  ;;  %v527_v20 = vld [vmem:[%s1541_s3 + $0x10] sm:$0xff]  ;;  %vm649_vm4 = vcmask 261120   ;;  %s1182_s21 = scalar_lea.vmem %s1467_s25, 1024 }
  0x1c   : > { %s1075_s20 = sshll.u32 %s339_s19, 3  ;;  %v435_v7 = vld [vmem:[%s1554_s2] sm:$0xff]  ;;  %v436_v9 = vld [vmem:[%s1554_s2 + $0x8] sm:$0xff]  ;;  %v528_v21 = vld [vmem:[%s1541_s3 + $0x18] sm:$0xff]  ;;  %s1473_s19 = scalar_lea.hbm %s1546_s8, %s1077_s11 }
  0x1d   : > { %s345_s23 = scalar_lea.vmem %s1552_s0, %s1075_s20  ;;  %v647_v38 = vld [vmem:[%s1542_s4] sm:$0xff]  ;;  %v648_v39 = vld [vmem:[%s1542_s4 + $0x8] sm:$0xff]  ;;  %p1183_p12 = scmp.ne.s32.totalorder %s1467_s25, %s1182_s21 }
  0x1e   : > { %v349_v1 = vld [vmem:[%s345_s23] sm:$0xff]  ;;  %s1186_s23 = sshll.u32 %s1291_s22, 4  ;;  %s1187_s23 = int_to_ptr.vmem [resolvable:$false] %s1186_s23 }
  0x1f   : > { %v352_v2 = vcombine.high %v349_v1, %v349_v1  ;;  %v737_v47 = vld [vmem:[%s1543_s5] sm:$0xff]  ;;  %p1184_p13 = pnand %p1183_p12, %p1380_p4  ;;  %p1189_p1 = scmp.lt.s32.totalorder %s1467_s25, %s1187_s23 }
  0x20   : > { %v814_v52 = vld [vmem:[%s1544_s6] sm:$0xf] }
  0x21   : > { %1054 = vmatprep.subr.msk.mxu0 %vm357_vm0, %v352_v2  ;;  %p1185_p0 = pneg %p1184_p13 }
  0x22   : > { %1055 = vmatpush1.msk.msra.mxu0 %vm357_vm0, %v349_v1 }
  0x23   : > { %1056 = vmatmul.mubr.msk.f32.vlgmr.msra.gmra.mxu0 %vm353_vm1, %v350_v3 }
  0x24   : > { %606 = vmatprep.mubr.f32.mxu0 %v1290_v0 }
  0xe3   : > { %v428_v4 = vpop.f32.mrf.mxu0 }
  0xe5   : > { %v430_v5 = vpop.f32.mrf.mxu0 }
  0xe6   : > { %1142 = vtanh.f32 %v430_v5 }
  0xe7   : > { %1144 = vtanh.f32 %v428_v4 }
  0xf3   : > { %v1143_v6 = vpop.eup %1142 }
  0xf4   : > { %v1145_v8 = vpop.eup %1144  ;;  %474 = vmatprep.subr.mxu1 %v1143_v6 }
  0xf5   : > { %475 = vmatpush1.msra.mxu1 %v1145_v8 }
  0xf6   : > { %1057 = vmatmul.mubr.msk.f32.vlgmr.msra.gmra.mxu1 %vm437_vm2, %v435_v7 }
  0xf7   : > { %514 = vmatprep.mubr.f32.mxu1 %v1290_v0 }
  0xfa   : > { %1058 = vmatmul.mubr.msk.f32.gmra.mxu1 %vm437_vm2, %v436_v9 }
  0xfb   : > { %720 = vmatprep.mubr.f32.mxu1 %v1290_v0 }
 0x1b6   : > { %v510_v10 = vpop.f32.mrf.mxu1 }
 0x1b8   : > { %v512_v11 = vpop.f32.mrf.mxu1 }
 0x1ba   : > { %v516_v12 = vpop.f32.mrf.mxu1 }
 0x1bc   : > { %v518_v13 = vpop.f32.mrf.mxu1 }
 0x1bd   : > { %1146 = vtanh.f32 %v518_v13 }
 0x1be   : > { %1148 = vtanh.f32 %v516_v12 }
 0x1bf   : > { %1150 = vtanh.f32 %v512_v11 }
 0x1c0   : > { %1152 = vtanh.f32 %v510_v10 }
 0x1ca   : > { %v1147_v14 = vpop.eup %1146 }
 0x1cb   : > { %v1149_v15 = vpop.eup %1148  ;;  %570 = vmatprep.subr.mxu0 %v1147_v14 }
 0x1cc   : > { %v1151_v16 = vpop.eup %1150  ;;  %571 = vmatpush1.msra.mxu0 %v1149_v15 }
 0x1cd   : > { %v1153_v18 = vpop.eup %1152  ;;  %572 = vmatprep.subr.mxu0 %v1151_v16 }
 0x1ce   : > { %573 = vmatpush1.msra.mxu0 %v1153_v18 }
 0x1cf   : > { %1059 = vmatmul.mubr.msk.f32.vlgmr.msra.gmra.mxu0 %vm529_vm3, %v525_v17 }
 0x1d0   : > { %612 = vmatprep.mubr.f32.mxu0 %v1290_v0 }
 0x1d3   : > { %1060 = vmatmul.mubr.msk.f32.gmra.mxu0 %vm529_vm3, %v526_v19 }
 0x1d4   : > { %618 = vmatprep.mubr.f32.mxu0 %v1290_v0 }
 0x1d7   : > { %1061 = vmatmul.mubr.msk.f32.gmra.mxu0 %vm529_vm3, %v527_v20 }
 0x1d8   : > { %624 = vmatprep.mubr.f32.mxu0 %v1290_v0 }
 0x1db   : > { %1062 = vmatmul.mubr.msk.f32.gmra.mxu0 %vm529_vm3, %v528_v21 }
 0x1dc   : > { %882 = vmatprep.mubr.f32.mxu0 %v1290_v0 }
 0x28f   : > { %v608_v22 = vpop.f32.mrf.mxu0 }
 0x290   : > { %1154 = vtanh.f32 %v608_v22 }
 0x291   : > { %v610_v23 = vpop.f32.mrf.mxu0 }
 0x292   : > { %1156 = vtanh.f32 %v610_v23 }
 0x293   : > { %v614_v24 = vpop.f32.mrf.mxu0 }
 0x294   : > { %1158 = vtanh.f32 %v614_v24 }
 0x295   : > { %v616_v25 = vpop.f32.mrf.mxu0 }
 0x296   : > { %1160 = vtanh.f32 %v616_v25 }
 0x297   : > { %v620_v26 = vpop.f32.mrf.mxu0 }
 0x298   : > { %1162 = vtanh.f32 %v620_v26 }
 0x299   : > { %v622_v27 = vpop.f32.mrf.mxu0 }
 0x29a   : > { %1164 = vtanh.f32 %v622_v27 }
 0x29b   : > { %v626_v28 = vpop.f32.mrf.mxu0 }
 0x29c   : > { %1166 = vtanh.f32 %v626_v28 }
 0x29d   : > { %v1155_v29 = vpop.eup %1154  ;;  %v628_v30 = vpop.f32.mrf.mxu0 }
 0x29e   : > { %1168 = vtanh.f32 %v628_v30  ;;  %639 = vst [vmem:[%s1440_s12] sm:$0xff] %v1155_v29 }
 0x29f   : > { %v1157_v31 = vpop.eup %1156 }
 0x2a0   : > { %640 = vst [vmem:[%s1440_s12 + $0x8] sm:$0xff] %v1157_v31 }
 0x2a1   : > { %v1159_v32 = vpop.eup %1158 }
 0x2a2   : > { %641 = vst [vmem:[%s1440_s12 + $0x10] sm:$0xff] %v1159_v32 }
 0x2a3   : > { %v1161_v33 = vpop.eup %1160 }
 0x2a4   : > { %642 = vst [vmem:[%s1440_s12 + $0x18] sm:$0xff] %v1161_v33 }
 0x2a5   : > { %v1163_v34 = vpop.eup %1162 }
 0x2a6   : > { %643 = vst [vmem:[%s1440_s12 + $0x20] sm:$0xff] %v1163_v34 }
 0x2a7   : > { %v1165_v35 = vpop.eup %1164 }
 0x2a8   : > { %644 = vst [vmem:[%s1440_s12 + $0x28] sm:$0xff] %v1165_v35 }
 0x2a9   : > { %v1167_v36 = vpop.eup %1166 }
 0x2aa   : > { %645 = vst [vmem:[%s1440_s12 + $0x30] sm:$0xff] %v1167_v36 }
 0x2ab   : > { %v1169_v37 = vpop.eup %1168 }
 0x2ac   : > { %680 = vmatprep.subr.mxu1 %v1169_v37  ;;  %646 = vst [vmem:[%s1440_s12 + $0x38] sm:$0xff] %v1169_v37  ;;  %s1188_s12 = scalar_lea.vmem %s1187_s23, 2048 }
 0x2ad   : > { %681 = vmatpush1.msra.mxu1 %v1167_v36  ;;  %p1190_p2 = scmp.lt.s32.totalorder %s1188_s12, %s1182_s21 }
 0x2ae   : > { %682 = vmatprep.subr.mxu1 %v1165_v35 }
 0x2af   : > { %683 = vmatpush1.msra.mxu1 %v1163_v34  ;;  %p1191_p3 = por %p1190_p2, %p1189_p1 }
 0x2b0   : > { %684 = vmatprep.subr.mxu1 %v1161_v33 }
 0x2b1   : > { %685 = vmatpush1.msra.mxu1 %v1159_v32  ;;  %p1192_p5 = pnand %p1191_p3, %p1185_p0 }
 0x2b2   : > { %686 = vmatprep.subr.mxu1 %v1157_v31 }
 0x2b3   : > { %687 = vmatpush1.msra.mxu1 %v1155_v29 }
 0x2b4   : > { %1063 = vmatmul.mubr.msk.f32.vlgmr.msra.gmra.mxu1 %vm649_vm4, %v647_v38 }
 0x2b5   : > { %726 = vmatprep.mubr.f32.mxu1 %v1290_v0 }
 0x2b8   : > { %1064 = vmatmul.mubr.msk.f32.gmra.mxu1 %vm649_vm4, %v648_v39 }
 0x2b9   : > { %805 = vmatprep.mubr.f32.mxu1 %v1290_v0 }
 0x374   : > { %v722_v40 = vpop.f32.mrf.mxu1 }
 0x376   : > { %v724_v41 = vpop.f32.mrf.mxu1 }
 0x378   : > { %v728_v42 = vpop.f32.mrf.mxu1 }
 0x37a   : > { %v730_v43 = vpop.f32.mrf.mxu1 }
 0x37b   : > { %1170 = vtanh.f32 %v730_v43 }
 0x37c   : > { %1172 = vtanh.f32 %v728_v42 }
 0x37d   : > { %1174 = vtanh.f32 %v724_v41 }
 0x37e   : > { %1176 = vtanh.f32 %v722_v40 }
 0x388   : > { %v1171_v44 = vpop.eup %1170 }
 0x389   : > { %v1173_v45 = vpop.eup %1172  ;;  %769 = vmatprep.subr.mxu1 %v1171_v44 }
 0x38a   : > { %v1175_v46 = vpop.eup %1174  ;;  %770 = vmatpush1.msra.mxu1 %v1173_v45 }
 0x38b   : > { %v1177_v48 = vpop.eup %1176  ;;  %771 = vmatprep.subr.mxu1 %v1175_v46 }
 0x38c   : > { %772 = vmatpush1.msra.mxu1 %v1177_v48 }
 0x38d   : > { %1065 = vmatmul.mubr.msk.f32.vlgmr.msra.gmra.mxu1 %vm529_vm3, %v737_v47 }
 0x44d   : > { %v807_v49 = vpop.f32.mrf.mxu1 }
 0x44f   : > { %v809_v50 = vpop.f32.mrf.mxu1 }
 0x450   : > { %1178 = vtanh.f32 %v809_v50 }
 0x451   : > { %1180 = vtanh.f32 %v807_v49 }
 0x45d   : > { %v1179_v51 = vpop.eup %1178 }
 0x45e   : > { %v1181_v53 = vpop.eup %1180  ;;  %848 = vmatprep.subr.mxu0 %v1179_v51 }
 0x45f   : > { %849 = vmatpush1.msra.mxu0 %v1181_v53 }
 0x460   : > { %1066 = vmatmul.mubr.msk.f32.vlgmr.msra.gmra.mxu0 %vm437_vm2, %v814_v52 }
 0x461   : > { %1195 = shalt.err (!%p1192_p5)
}
 0x462   : > { %s1196_s24 = scalar_lea.hbm %s1473_s19, 1024  ;;  %s1200_s16 = scalar_lea.hbm %s1546_s8, 2048 }
 0x463   : > { %p1197_p6 = scmp.ne.s32.totalorder %s1473_s19, %s1196_s24  ;;  %p1201_p10 = scmp.lt.s32.totalorder %s1473_s19, %s1546_s8 }
 0x464   : > { %p1202_p11 = scmp.lt.s32.totalorder %s1200_s16, %s1196_s24 }
 0x465   : > { %p1198_p7 = pnand %p1197_p6, %p1380_p4 }
 0x466   : > { %p1203_p12 = por %p1202_p11, %p1201_p10 }
 0x467   : > { %p1199_p9 = pneg %p1198_p7 }
 0x469   : > { %p1204_p13 = pnand %p1203_p12, %p1199_p9 }
 0x46b   : > { %1207 = shalt.err (!%p1204_p13)
}
 0x46c   : > { %s1292_s21 = smov 256   ;;  %s1293_s23 = smov 16  }
 0x46d   : > { %s1555_s12 = scalar_lea.sflag [#allocation5], %s1437_s26  ;;  %s1050_s11 = sshll.u32 %s1437_s26, 3 }
 0x46e   : > { %1079 = dma.vmem_to_hbm [thread:$0]  (%p1380_p4), %s1467_s25, 1024, %s1473_s19, %s1555_s12, %s1292_s21, %s1292_s21, %s1293_s23  }
 0x46f   : > { %s1076_s20 = sshll.u32 %s1280_s30, 7  ;;  %s329_s24 = scalar_lea.vmem [#allocation2], %s1050_s11 }
 0x470   : > { %s916_s14 = sshll.u32 %s329_s24, 4  ;;  %s914_s0 = scalar_lea.hbm %s1545_s7, %s1076_s20  ;;  %s917_s14 = int_to_ptr.vmem [resolvable:$true] %s916_s14 }
 0x471   : > { %s895_s1 = scalar_lea.sflag [#allocation3], %s1437_s26  ;;  %s1208_s2 = scalar_lea.vmem %s917_s14, 128 }
 0x472   : > { %p1209_p0 = scmp.ne.s32.totalorder %s917_s14, %s1208_s2  ;;  %s1294_s25 = smov [#allocation2]  }
 0x473   : > { %s1212_s19 = sshll.u32 %s1294_s25, 4  ;;  %s1213_s19 = int_to_ptr.vmem [resolvable:$false] %s1212_s19 }
 0x474   : > { %p1210_p1 = pnand %p1209_p0, %p1380_p4  ;;  %s1214_s30 = scalar_lea.vmem %s1213_s19, 256 }
 0x475   : > { %p1215_p3 = scmp.lt.s32.totalorder %s917_s14, %s1213_s19  ;;  %p1216_p5 = scmp.lt.s32.totalorder %s1214_s30, %s1208_s2 }
 0x476   : > { %p1211_p2 = pneg %p1210_p1 }
 0x477   : > { %p1217_p6 = por %p1216_p5, %p1215_p3 }
 0x479   : > { %p1218_p7 = pnand %p1217_p6, %p1211_p2 }
 0x520   : > { %v884_v54 = vpop.f32.mrf.mxu0 }
 0x522   : > { %v886_v55 = vpop.f32.mrf.mxu0 }
 0x523   : > { %v891_v56 = vcombine.low %v884_v54, %v886_v55 }
 0x525   : > { %893 = vst [vmem:[%s329_s24] sm:$0xff] %v891_v56 }
 0x526   : > { %1221 = shalt.err (!%p1218_p7)
}
 0x527   : > { %s1222_s21 = scalar_lea.hbm %s914_s0, 128  ;;  %s1226_s12 = scalar_lea.hbm %s1545_s7, 256 }
 0x528   : > { %p1223_p9 = scmp.ne.s32.totalorder %s914_s0, %s1222_s21  ;;  %p1227_p12 = scmp.lt.s32.totalorder %s914_s0, %s1545_s7 }
 0x529   : > { %p1228_p13 = scmp.lt.s32.totalorder %s1226_s12, %s1222_s21 }
 0x52a   : > { %p1224_p10 = pnand %p1223_p9, %p1380_p4 }
 0x52b   : > { %p1229_p0 = por %p1228_p13, %p1227_p12 }
 0x52c   : > { %p1225_p11 = pneg %p1224_p10 }
 0x52e   : > { %p1230_p1 = pnand %p1229_p0, %p1225_p11 }
 0x530   : > { %1233 = shalt.err (!%p1230_p1)
}
 0x531   : > { %1078 = dma.vmem_to_hbm [thread:$0]  (%p1380_p4), %s917_s14, 128, %s914_s0, %s895_s1  }
 0x532 PF: > { %p1089_p2 = scmp.ge.s32.totalorder %s1288_s10, 2  ;;  %s946_s2 = sand.u32 1, %s1268_s27  }
 0x533   : > { %s947_s24 = scalar_lea.sflag [#allocation3], %s946_s2 }
 0x534   : > { %p1083_p3 = pnand %p1089_p2, %p1387_p8 }
 0x536   : > { %p1084_p5 = pneg %p1083_p3 }
 0x538   : > { %1259 = dma.done.wait (%p1084_p5), %s947_s24, 128  }
 0x539   : > { %1261 = vsyncadd (%p1084_p5), %s947_s24, 4294967168  ;;  %s956_s16 = scalar_lea.sflag [#allocation5], %s946_s2 }
 0x53a   : > { %1263 = dma.done.wait (%p1084_p5), %s956_s16, 1024  }
 0x53b   : > { %1265 = vsyncadd (%p1084_p5), %s956_s16, 4294966272  ;;  %s25_s10 = sadd.s32 1, %s1288_s10   ;;  %s1556_s27 = smov %s1272_s28 }
 0x53c   : > { %p22_p6 = scmp.ge.s32.totalorder %s25_s10, 4   ;;  %s1557_s28 = smov %s1276_s29 }
 0x53d   : > { %s1558_s29 = smov %s1393_s18  ;;  %s1559_s30 = smov %s1284_s9 }
 0x53e   : > { %s1560_s9 = smov %s1562_s13  ;;  %24 = sbr.rel (!%p22_p6) target bundleno = 10 (0xa), region = 100 }
 0x543   :  { %961 = vsyncpa [#allocation3], 1 }
 0x544   :  { %963 = vsyncpa [#allocation3 + $0x1], 1 }
 0x545   :  { %964 = vsyncpa [#allocation5], 1 }
 0x546   :  { %966 = vsyncpa [#allocation5 + $0x1], 1 }

</bundles_post_ra>
